<compile_context>
chip_gen: v6e
topology: v6e:2x2x1
jax: 0.10.0
libtpu: 0.0.40
codegen_flags: <defaults>
</compile_context>

<pallas_src>
import functools

import jax
import jax.numpy as jnp
from jax.experimental import pallas as pl
from jax.experimental.pallas import tpu as pltpu


# ---------------------------------------------------------------------------
# Kernel: one batch tile -> padded action probabilities.
# ---------------------------------------------------------------------------
def actor_kernel(obs_ref, w1_ref, b1_ref, w2_ref, b2_ref, w3_ref, b3_ref,
                 probs_ref):
    # fused fc1_self | fc1_others  (bf16 x bf16 -> f32) + bias + ReLU
    h1 = jnp.dot(obs_ref[...], w1_ref[...],
                 preferred_element_type=jnp.float32) + b1_ref[...]
    h1 = jnp.maximum(h1, 0.0)

    # fused (x1_self @ w2_self + x1_others @ w2_others) + b2 + ReLU
    h2 = jnp.dot(h1.astype(jnp.bfloat16), w2_ref[...],
                 preferred_element_type=jnp.float32) + b2_ref[...]
    h2 = jnp.maximum(h2, 0.0)

    # fc3 (padded to 128 output lanes; pad columns carry a -1e30 bias)
    logits = jnp.dot(h2.astype(jnp.bfloat16), w3_ref[...],
                     preferred_element_type=jnp.float32) + b3_ref[...]

    # numerically stable softmax over the padded lane dim; pad columns -> 0
    m = jnp.max(logits, axis=-1, keepdims=True)
    e = jnp.exp(logits - m)
    denom = jnp.sum(e, axis=-1, keepdims=True)
    probs_ref[...] = (e * pl.reciprocal(denom, approx=True)).astype(
        probs_ref.dtype)


# ---------------------------------------------------------------------------
# Host-side packing of the PyTorch-layout parameters into the fused layout.
# ---------------------------------------------------------------------------
def pack_params(p, *, lane_pad=128):
    obs = p["w1_self"].shape[0]
    n_h1s = p["w1_self"].shape[1]
    n_h1o = p["w1_others"].shape[1]
    n_h2 = p["w2_self"].shape[1]
    n_act = p["w3"].shape[1]
    n_h1 = n_h1s + n_h1o
    n_h2_pad = max(lane_pad, n_h2)
    n_act_pad = max(lane_pad, n_act)

    # block-diagonal W1:  [ w1_self   0        ]
    #                     [ 0         w1_others]
    w1 = jnp.zeros((2 * obs, n_h1), jnp.float32)
    w1 = w1.at[:obs, :n_h1s].set(p["w1_self"])
    w1 = w1.at[obs:, n_h1s:].set(p["w1_others"])
    b1 = jnp.concatenate([p["b1_self"], p["b1_others"]], axis=1)

    # row-stacked W2 (zero-padded output lanes)
    w2 = jnp.zeros((n_h1, n_h2_pad), jnp.float32)
    w2 = w2.at[:n_h1s, :n_h2].set(p["w2_self"])
    w2 = w2.at[n_h1s:, :n_h2].set(p["w2_others"])
    b2 = jnp.zeros((1, n_h2_pad), jnp.float32).at[:, :n_h2].set(p["b2"])

    # fc3, zero-padded rows/cols; pad logit columns biased to -1e30
    w3 = jnp.zeros((n_h2_pad, n_act_pad), jnp.float32)
    w3 = w3.at[:n_h2, :n_act].set(p["w3"])
    b3 = jnp.full((1, n_act_pad), -1e30, jnp.float32)
    b3 = b3.at[:, :n_act].set(p["b3"])

    return dict(
        w1=w1.astype(jnp.bfloat16), b1=b1,
        w2=w2.astype(jnp.bfloat16), b2=b2,
        w3=w3.astype(jnp.bfloat16), b3=b3,
        n_actions=n_act,
    )


# ---------------------------------------------------------------------------
# Wrapper: batch-tiled pallas_call.
# ---------------------------------------------------------------------------
@functools.partial(jax.jit, static_argnames=("batch_tile",))
def _actor_forward_packed(obs_cat_bf16, w1, b1, w2, b2, w3, b3, *,
                          batch_tile):
    b_pad, d_in = obs_cat_bf16.shape
    n_h1 = w1.shape[1]
    n_h2 = w2.shape[1]
    n_act_pad = w3.shape[1]
    grid = (b_pad // batch_tile,)

    return pl.pallas_call(
        actor_kernel,
        out_shape=jax.ShapeDtypeStruct((b_pad, n_act_pad), jnp.float32),
        grid_spec=pltpu.PrefetchScalarGridSpec(
            num_scalar_prefetch=0,
            grid=grid,
            in_specs=[
                pl.BlockSpec((batch_tile, d_in), lambda i: (i, 0)),   # obs
                pl.BlockSpec((d_in, n_h1), lambda i: (0, 0)),         # W1
                pl.BlockSpec((1, n_h1), lambda i: (0, 0)),            # b1
                pl.BlockSpec((n_h1, n_h2), lambda i: (0, 0)),         # W2
                pl.BlockSpec((1, n_h2), lambda i: (0, 0)),            # b2
                pl.BlockSpec((n_h2, n_act_pad), lambda i: (0, 0)),    # W3
                pl.BlockSpec((1, n_act_pad), lambda i: (0, 0)),       # b3
            ],
            out_specs=pl.BlockSpec((batch_tile, n_act_pad),
                                   lambda i: (i, 0)),
        ),
        compiler_params=pltpu.CompilerParams(
            dimension_semantics=("parallel",)),
    )(obs_cat_bf16, w1, b1, w2, b2, w3, b3)


def actor_forward(obs_self, obs_others, packed, *, batch_tile=128):
    """stage=2 Actor forward. Returns (batch, n_actions) probabilities."""
    batch = obs_self.shape[0]
    n_act = packed["n_actions"]

    obs_cat = jnp.concatenate([obs_self, obs_others], axis=1)
    b_pad = pl.cdiv(batch, batch_tile) * batch_tile
    if b_pad != batch:
        obs_cat = jnp.pad(obs_cat, ((0, b_pad - batch), (0, 0)))
    obs_cat = obs_cat.astype(jnp.bfloat16)   # halve obs DMA; bf16 MXU operands

    probs_pad = _actor_forward_packed(
        obs_cat, packed["w1"], packed["b1"], packed["w2"], packed["b2"],
        packed["w3"], packed["b3"], batch_tile=batch_tile)
    return probs_pad[:batch, :n_act]


# ---------------------------------------------------------------------------
# Parameter init (mirrors nn.Linear defaults + reset_params) and reference.
# ---------------------------------------------------------------------------
def init_params(key, obs_shape, n_h1_self, n_h1_others, n_h2, n_actions):
    ks = jax.random.split(key, 9)

    def lin(kw, kb, fan_in, fan_out):
        bound = 1.0 / jnp.sqrt(jnp.float32(fan_in))
        w = jax.random.uniform(kw, (fan_in, fan_out), jnp.float32,
                               -bound, bound)
        b = jax.random.uniform(kb, (1, fan_out), jnp.float32, -bound, bound)
        return w, b

    w1s, b1s = lin(ks[0], ks[1], obs_shape, n_h1_self)
    w1o, b1o = lin(ks[2], ks[3], obs_shape, n_h1_others)
    w3, b3 = lin(ks[4], ks[5], n_h2, n_actions)
    # reset_params(): normal(0, 0.01) for w2_self, w2_others, b2
    w2s = 0.01 * jax.random.normal(ks[6], (n_h1_self, n_h2), jnp.float32)
    w2o = 0.01 * jax.random.normal(ks[7], (n_h1_others, n_h2), jnp.float32)
    b2 = 0.01 * jax.random.normal(ks[8], (1, n_h2), jnp.float32)
    return dict(
        w1_self=w1s, b1_self=b1s, w2_self=w2s,
        w1_others=w1o, b1_others=b1o, w2_others=w2o,
        b2=b2, w3=w3, b3=b3,
    )


def actor_reference(obs_self, obs_others, p):
    """Plain-JAX reference with matching bf16 MXU-operand precision."""
    def bdot(a, b):
        return jnp.dot(a.astype(jnp.bfloat16), b.astype(jnp.bfloat16),
                       preferred_element_type=jnp.float32)

    x1s = jax.nn.relu(bdot(obs_self, p["w1_self"]) + p["b1_self"])
    x2s = bdot(x1s, p["w2_self"])
    x1o = jax.nn.relu(bdot(obs_others, p["w1_others"]) + p["b1_others"])
    x2o = bdot(x1o, p["w2_others"])
    x3 = jax.nn.relu(x2s + x2o + p["b2"])
    out = bdot(x3, p["w3"]) + p["b3"]
    return jax.nn.softmax(out, axis=-1)


if __name__ == "__main__":
    # Shapes consistent with the module: args.obs_shape=16, hidden widths 64,
    # args.n_actions=8; batch=128 rows (one lane/sublane-dense tile).
    batch, obs_shape = 128, 16
    n_h1_self, n_h1_others, n_h2 = 64, 64, 64
    n_actions = 8

    key = jax.random.PRNGKey(0)
    k_obs_s, k_obs_o, k_params = jax.random.split(key, 3)

    obs_self = jax.random.normal(k_obs_s, (batch, obs_shape), jnp.float32)
    obs_others = jax.random.normal(k_obs_o, (batch, obs_shape), jnp.float32)
    params = init_params(k_params, obs_shape, n_h1_self, n_h1_others,
                         n_h2, n_actions)
    packed = pack_params(params)

    probs = actor_forward(obs_self, obs_others, packed)
    probs = jax.block_until_ready(probs)

    ref = actor_reference(obs_self, obs_others, params)
    assert probs.shape == (batch, n_actions)
    # approx reciprocal (EUP) + bf16 MXU operands => looser tolerances.
    assert jnp.allclose(jnp.sum(probs, axis=-1), 1.0, atol=3e-3)
    assert jnp.allclose(probs, ref, atol=3e-3, rtol=3e-2)

    print("KERNEL_OK")
</pallas_src>

<mosaic_0001>
module attributes {stable_mosaic.version = 11 : i64} {
  func.func @actor_kernel(%arg0: i32, %arg1: memref<128x32xbf16, #tpu.memory_space<vmem>>, %arg2: memref<32x128xbf16, #tpu.memory_space<vmem>>, %arg3: memref<1x128xf32, #tpu.memory_space<vmem>>, %arg4: memref<128x128xbf16, #tpu.memory_space<vmem>>, %arg5: memref<1x128xf32, #tpu.memory_space<vmem>>, %arg6: memref<128x128xbf16, #tpu.memory_space<vmem>>, %arg7: memref<1x128xf32, #tpu.memory_space<vmem>>, %arg8: memref<128x128xf32, #tpu.memory_space<vmem>>) attributes {dimension_semantics = [#tpu.dimension_semantics<parallel>], iteration_bounds = array<i64: 1>, scalar_prefetch = 0 : i64, scratch_operands = 0 : i64, tpu.core_type = #tpu.core_type<tc>, window_params = [{transform_indices = @transform_0, window_bounds = array<i64: 128, 32>}, {pipeline_mode = #tpu.pipeline_mode<synchronous>, transform_indices = @transform_1, window_bounds = array<i64: 32, 128>}, {pipeline_mode = #tpu.pipeline_mode<synchronous>, transform_indices = @transform_2, window_bounds = array<i64: 1, 128>}, {pipeline_mode = #tpu.pipeline_mode<synchronous>, transform_indices = @transform_3, window_bounds = array<i64: 128, 128>}, {pipeline_mode = #tpu.pipeline_mode<synchronous>, transform_indices = @transform_4, window_bounds = array<i64: 1, 128>}, {pipeline_mode = #tpu.pipeline_mode<synchronous>, transform_indices = @transform_5, window_bounds = array<i64: 128, 128>}, {pipeline_mode = #tpu.pipeline_mode<synchronous>, transform_indices = @transform_6, window_bounds = array<i64: 1, 128>}, {transform_indices = @transform_7, window_bounds = array<i64: 128, 128>}]} {
    %c0 = arith.constant 0 : index
    %c0_0 = arith.constant 0 : index
    %0 = vector.load %arg1[%c0, %c0_0] : memref<128x32xbf16, #tpu.memory_space<vmem>>, vector<128x32xbf16>
    %c0_1 = arith.constant 0 : index
    %c0_2 = arith.constant 0 : index
    %1 = vector.load %arg2[%c0_1, %c0_2] : memref<32x128xbf16, #tpu.memory_space<vmem>>, vector<32x128xbf16>
    %cst = arith.constant dense<0.000000e+00> : vector<128x128xf32>
    %2 = tpu.matmul %0, %1, %cst {dimension_numbers = #tpu.dot_dimension_numbers<[1], [0], [0], [1], [0, 0, 1, 1], [], []>} : vector<128x32xbf16>, vector<32x128xbf16>, vector<128x128xf32> -> vector<128x128xf32>
    %c0_3 = arith.constant 0 : index
    %c0_4 = arith.constant 0 : index
    %3 = vector.load %arg3[%c0_3, %c0_4] : memref<1x128xf32, #tpu.memory_space<vmem>>, vector<1x128xf32>
    %4 = vector.broadcast %3 : vector<1x128xf32> to vector<128x128xf32>
    %5 = arith.addf %2, %4 : vector<128x128xf32>
    %cst_5 = arith.constant 0.000000e+00 : f32
    %6 = vector.broadcast %cst_5 : f32 to vector<128x128xf32>
    %7 = arith.maximumf %5, %6 : vector<128x128xf32>
    %8 = arith.truncf %7 : vector<128x128xf32> to vector<128x128xbf16>
    %c0_6 = arith.constant 0 : index
    %c0_7 = arith.constant 0 : index
    %9 = vector.load %arg4[%c0_6, %c0_7] : memref<128x128xbf16, #tpu.memory_space<vmem>>, vector<128x128xbf16>
    %cst_8 = arith.constant dense<0.000000e+00> : vector<128x128xf32>
    %10 = tpu.matmul %8, %9, %cst_8 {dimension_numbers = #tpu.dot_dimension_numbers<[1], [0], [0], [1], [0, 0, 1, 1], [], []>} : vector<128x128xbf16>, vector<128x128xbf16>, vector<128x128xf32> -> vector<128x128xf32>
    %c0_9 = arith.constant 0 : index
    %c0_10 = arith.constant 0 : index
    %11 = vector.load %arg5[%c0_9, %c0_10] : memref<1x128xf32, #tpu.memory_space<vmem>>, vector<1x128xf32>
    %12 = vector.broadcast %11 : vector<1x128xf32> to vector<128x128xf32>
    %13 = arith.addf %10, %12 : vector<128x128xf32>
    %cst_11 = arith.constant 0.000000e+00 : f32
    %14 = vector.broadcast %cst_11 : f32 to vector<128x128xf32>
    %15 = arith.maximumf %13, %14 : vector<128x128xf32>
    %16 = arith.truncf %15 : vector<128x128xf32> to vector<128x128xbf16>
    %c0_12 = arith.constant 0 : index
    %c0_13 = arith.constant 0 : index
    %17 = vector.load %arg6[%c0_12, %c0_13] : memref<128x128xbf16, #tpu.memory_space<vmem>>, vector<128x128xbf16>
    %cst_14 = arith.constant dense<0.000000e+00> : vector<128x128xf32>
    %18 = tpu.matmul %16, %17, %cst_14 {dimension_numbers = #tpu.dot_dimension_numbers<[1], [0], [0], [1], [0, 0, 1, 1], [], []>} : vector<128x128xbf16>, vector<128x128xbf16>, vector<128x128xf32> -> vector<128x128xf32>
    %c0_15 = arith.constant 0 : index
    %c0_16 = arith.constant 0 : index
    %19 = vector.load %arg7[%c0_15, %c0_16] : memref<1x128xf32, #tpu.memory_space<vmem>>, vector<1x128xf32>
    %20 = vector.broadcast %19 : vector<1x128xf32> to vector<128x128xf32>
    %21 = arith.addf %18, %20 : vector<128x128xf32>
    %cst_17 = arith.constant dense<0xFF800000> : vector<128xf32>
    %22 = vector.multi_reduction <maximumf>, %21, %cst_17 [1] : vector<128x128xf32> to vector<128xf32>
    %23 = vector.shape_cast %22 : vector<128xf32> to vector<128x1xf32>
    %24 = vector.broadcast %23 : vector<128x1xf32> to vector<128x128xf32>
    %25 = arith.subf %21, %24 : vector<128x128xf32>
    %26 = math.exp %25 : vector<128x128xf32>
    %cst_18 = arith.constant dense<0.000000e+00> : vector<128xf32>
    %27 = vector.multi_reduction <add>, %26, %cst_18 [1] : vector<128x128xf32> to vector<128xf32>
    %28 = vector.shape_cast %27 : vector<128xf32> to vector<128x1xf32>
    %29 = tpu.reciprocal %28 {approx = true} : vector<128x1xf32> -> vector<128x1xf32>
    %30 = vector.broadcast %29 : vector<128x1xf32> to vector<128x128xf32>
    %31 = arith.mulf %26, %30 : vector<128x128xf32>
    %c0_19 = arith.constant 0 : index
    %c0_20 = arith.constant 0 : index
    %32 = vector.load %arg8[%c0_19, %c0_20] : memref<128x128xf32, #tpu.memory_space<vmem>>, vector<128x128xf32>
    tpu.vector_store %arg8[%c0_19, %c0_20], %31 {strides = array<i32>} : memref<128x128xf32, #tpu.memory_space<vmem>>, vector<128x128xf32>,
    return
  }
  func.func @transform_0(%arg0: i32) -> (i32, i32) {
    %c0_i32 = arith.constant 0 : i32
    %c0_i32_0 = arith.constant 0 : i32
    return %arg0, %c0_i32 : i32, i32
  }
  func.func @transform_1(%arg0: i32) -> (i32, i32) {
    %c0_i32 = arith.constant 0 : i32
    %c0_i32_0 = arith.constant 0 : i32
    %c0_i32_1 = arith.constant 0 : i32
    return %c0_i32, %c0_i32_0 : i32, i32
  }
  func.func @transform_2(%arg0: i32) -> (i32, i32) {
    %c0_i32 = arith.constant 0 : i32
    %c0_i32_0 = arith.constant 0 : i32
    %c0_i32_1 = arith.constant 0 : i32
    return %c0_i32, %c0_i32_0 : i32, i32
  }
  func.func @transform_3(%arg0: i32) -> (i32, i32) {
    %c0_i32 = arith.constant 0 : i32
    %c0_i32_0 = arith.constant 0 : i32
    %c0_i32_1 = arith.constant 0 : i32
    return %c0_i32, %c0_i32_0 : i32, i32
  }
  func.func @transform_4(%arg0: i32) -> (i32, i32) {
    %c0_i32 = arith.constant 0 : i32
    %c0_i32_0 = arith.constant 0 : i32
    %c0_i32_1 = arith.constant 0 : i32
    return %c0_i32, %c0_i32_0 : i32, i32
  }
  func.func @transform_5(%arg0: i32) -> (i32, i32) {
    %c0_i32 = arith.constant 0 : i32
    %c0_i32_0 = arith.constant 0 : i32
    %c0_i32_1 = arith.constant 0 : i32
    return %c0_i32, %c0_i32_0 : i32, i32
  }
  func.func @transform_6(%arg0: i32) -> (i32, i32) {
    %c0_i32 = arith.constant 0 : i32
    %c0_i32_0 = arith.constant 0 : i32
    %c0_i32_1 = arith.constant 0 : i32
    return %c0_i32, %c0_i32_0 : i32, i32
  }
  func.func @transform_7(%arg0: i32) -> (i32, i32) {
    %c0_i32 = arith.constant 0 : i32
    %c0_i32_0 = arith.constant 0 : i32
    return %arg0, %c0_i32 : i32, i32
  }
}

</mosaic_0001>

<bundles_post_ra>
// kernel: _actor_forward_packed.1
= control target key start
LH: loop header
LB: loop body
LE: loop exit
PB: predicated region body
PF: predicated region fallthrough
CT: control target
= control target key end

     0   :  { %12 = vsyncpa [#allocation3], 0  ;;  %s1322_s0 = inlined_call_operand.vmem [shape: bf16[128,32], index: 0, kind: input, shape index: {}]   ;;  %s1323_s1 = inlined_call_operand.vmem [shape: bf16[32,128], index: 1, kind: input, shape index: {}]   ;;  %s1324_s2 = inlined_call_operand.vmem [shape: f32[1,128], index: 2, kind: input, shape index: {}]   ;;  %s1325_s3 = inlined_call_operand.vmem [shape: bf16[128,128], index: 3, kind: input, shape index: {}]   ;;  %s1326_s4 = inlined_call_operand.vmem [shape: f32[1,128], index: 4, kind: input, shape index: {}]   ;;  %s1327_s5 = inlined_call_operand.hbm [shape: bf16[128,128], index: 5, kind: input, shape index: {}]   ;;  %s1328_s6 = inlined_call_operand.vmem [shape: f32[1,128], index: 6, kind: input, shape index: {}]   ;;  %s1329_s7 = inlined_call_operand.hbm [shape: f32[128,128], index: 7, kind: output, shape index: {}]  }
   0x1   :  { %13 = vsyncpa [#allocation4], 0  ;;  %s1107_s24 = smov [#allocation2]  }
   0x2   :  { %s29_s25 = sshll.u32 %s1107_s24, 4  ;;  %s30_s25 = int_to_ptr.vmem [resolvable:$true] %s29_s25 }
   0x3   :  { %s1071_s26 = scalar_lea.vmem %s30_s25, 1024  ;;  %p1076_p1 = scmp.lt.s32.totalorder %s30_s25, %s30_s25 }
   0x4   :  { %p1072_p0 = scmp.ne.s32.totalorder %s30_s25, %s1071_s26  ;;  %p1077_p2 = scmp.lt.s32.totalorder %s1071_s26, %s1071_s26 }
   0x6   :  { %p1078_p3 = por %p1077_p2, %p1076_p1 }
   0x8   :  { %p1079_p4 = pnand %p1078_p3, %p1072_p0 }
   0xa   :  { %1082 = shalt.err (!%p1079_p4)
}
   0xb   :  { %s1108_s27 = smov 64   ;;  %s1109_s28 = smov 4  }
   0xc   :  { %35 = dma.hbm_to_vmem [thread:$0]  %s1327_s5, 1024, %s30_s25, [#allocation3], %s1108_s27, %s1108_s27, %s1109_s28  }
   0xd   :  { %1103 = dma.done.wait [#allocation3], 1024  }
   0xe   :  { %1104 = vsyncadd [#allocation3], 4294966272  ;;  %v973_v0 = vld [vmem:[%s1323_s1 + $0x8] sm:$0xff]   ;;  %v974_v1 = vld [vmem:[%s1323_s1] sm:$0xff]   ;;  %vm121_vm0 = vcmask 261120  }
   0xf   :  { %883 = vmatprep.subr.bf16.mxu0 %v973_v0  ;;  %v975_v2 = vld [vmem:[%s1322_s0] sm:$0xff]   ;;  %v976_v3 = vld [vmem:[%s1322_s0 + $0x8] sm:$0xff]   ;;  %v977_v4 = vld [vmem:[%s1322_s0 + $0x10] sm:$0xff]  }
  0x10   :  { %884 = vmatpush3.bf16.msra.mxu0 %v973_v0  ;;  %887 = vmatprep.mubr.msk.bf16.mxu0 %vm121_vm0, %v975_v2  ;;  %v983_v5 = vld [vmem:[%s1325_s3 + $0x38] sm:$0xff]   ;;  %v984_v6 = vld [vmem:[%s1325_s3 + $0x30] sm:$0xff]   ;;  %v979_v8 = vld [vmem:[%s1322_s0 + $0x20] sm:$0xff]  }
  0x11   :  { %885 = vmatprep.subr.bf16.mxu0 %v974_v1  ;;  %v978_v7 = vld [vmem:[%s1322_s0 + $0x18] sm:$0xff]   ;;  %903 = vmatprep.subr.bf16.mxu1 %v983_v5  ;;  %v985_v9 = vld [vmem:[%s1325_s3 + $0x28] sm:$0xff]   ;;  %v986_v10 = vld [vmem:[%s1325_s3 + $0x20] sm:$0xff]  }
  0x12   :  { %904 = vmatpush3.bf16.msra.mxu1 %v983_v5  ;;  %v980_v11 = vld [vmem:[%s1322_s0 + $0x28] sm:$0xff]   ;;  %v987_v12 = vld [vmem:[%s1325_s3 + $0x18] sm:$0xff]   ;;  %v981_v13 = vld [vmem:[%s1322_s0 + $0x30] sm:$0xff]  }
  0x13   :  { %905 = vmatprep.subr.bf16.mxu1 %v984_v6  ;;  %v982_v14 = vld [vmem:[%s1322_s0 + $0x38] sm:$0xff]   ;;  %v988_v15 = vld [vmem:[%s1325_s3 + $0x10] sm:$0xff]   ;;  %v989_v16 = vld [vmem:[%s1325_s3 + $0x8] sm:$0xff]  }
  0x14   :  { %886 = vmatpush3.bf16.msra.mxu0 %v974_v1  ;;  %v990_v17 = vld [vmem:[%s1325_s3] sm:$0xff]   ;;  %v991_v18 = vld [vmem:[#allocation2 + $0x38] sm:$0xff]   ;;  %v992_v19 = vld [vmem:[#allocation2 + $0x30] sm:$0xff]  }
  0x15   :  { %935 = vmatprep.subr.bf16.mxu0 %v991_v18  ;;  %v993_v20 = vld [vmem:[#allocation2 + $0x28] sm:$0xff]   ;;  %v994_v21 = vld [vmem:[#allocation2 + $0x20] sm:$0xff]   ;;  %v995_v22 = vld [vmem:[#allocation2 + $0x18] sm:$0xff]  }
  0x16   :  { %906 = vmatpush3.bf16.msra.mxu1 %v984_v6  ;;  %v804_v25 = vld [vmem:[%s1324_s2] ss:$0 sm:$0xff] }
  0x17   :  { %888 = vmatmul.mubr.msk.bf16.vlgmr.msra.gmra.mxu0 %vm121_vm0, %v976_v3  ;;  %907 = vmatprep.subr.bf16.mxu1 %v985_v9 }
  0x18   :  { %891 = vmatprep.mubr.msk.bf16.mxu0 %vm121_vm0, %v977_v4  ;;  %936 = vmatpush3.bf16.msra.mxu0 %v991_v18  ;;  %v998_v18 = vld [vmem:[#allocation2] sm:$0xff]  }
  0x19   :  { %937 = vmatprep.subr.bf16.mxu0 %v992_v19 }
  0x1a   :  { %908 = vmatpush3.bf16.msra.mxu1 %v985_v9 }
  0x1b   :  { %909 = vmatprep.subr.bf16.mxu1 %v986_v10 }
  0x1c   :  { %938 = vmatpush3.bf16.msra.mxu0 %v992_v19 }
  0x1d   :  { %939 = vmatprep.subr.bf16.mxu0 %v993_v20 }
  0x1e   :  { %910 = vmatpush3.bf16.msra.mxu1 %v986_v10 }
  0x1f   :  { %892 = vmatmul.mubr.msk.bf16.gmra.mxu0 %vm121_vm0, %v978_v7  ;;  %911 = vmatprep.subr.bf16.mxu1 %v987_v12 }
  0x20   :  { %895 = vmatprep.mubr.msk.bf16.mxu0 %vm121_vm0, %v979_v8  ;;  %940 = vmatpush3.bf16.msra.mxu0 %v993_v20 }
  0x21   :  { %941 = vmatprep.subr.bf16.mxu0 %v994_v21 }
  0x22   :  { %912 = vmatpush3.bf16.msra.mxu1 %v987_v12 }
  0x23   :  { %913 = vmatprep.subr.bf16.mxu1 %v988_v15 }
  0x24   :  { %942 = vmatpush3.bf16.msra.mxu0 %v994_v21  ;;  %v823_v21 = vld [vmem:[%s1326_s4] ss:$0 sm:$0xff] }
  0x25   :  { %943 = vmatprep.subr.bf16.mxu0 %v995_v22 }
  0x26   :  { %914 = vmatpush3.bf16.msra.mxu1 %v988_v15 }
  0x27   :  { %896 = vmatmul.mubr.msk.bf16.gmra.mxu0 %vm121_vm0, %v980_v11  ;;  %915 = vmatprep.subr.bf16.mxu1 %v989_v16 }
  0x28   :  { %899 = vmatprep.mubr.msk.bf16.mxu0 %vm121_vm0, %v981_v13  ;;  %944 = vmatpush3.bf16.msra.mxu0 %v995_v22 }
  0x2a   :  { %916 = vmatpush3.bf16.msra.mxu1 %v989_v16  ;;  %v996_v16 = vld [vmem:[#allocation2 + $0x10] sm:$0xff]  }
  0x2b   :  { %917 = vmatprep.subr.bf16.mxu1 %v990_v17  ;;  %945 = vmatprep.subr.bf16.mxu0 %v996_v16 }
  0x2c   :  { %946 = vmatpush3.bf16.msra.mxu0 %v996_v16 }
  0x2e   :  { %918 = vmatpush3.bf16.msra.mxu1 %v990_v17  ;;  %v997_v17 = vld [vmem:[#allocation2 + $0x8] sm:$0xff]  }
  0x2f   :  { %900 = vmatmul.mubr.msk.bf16.gmra.mxu0 %vm121_vm0, %v982_v14  ;;  %947 = vmatprep.subr.bf16.mxu0 %v997_v17 }
  0x30   :  { %948 = vmatpush3.bf16.msra.mxu0 %v997_v17 }
  0x31   :  { %949 = vmatprep.subr.bf16.mxu0 %v998_v18 }
  0x34   :  { %950 = vmatpush3.bf16.msra.mxu0 %v998_v18 }
  0xd7   :  { %v889_v23 = vpop.f32.mrf.mxu0 }
  0xd8   :  { %v189_v29 = vadd.f32 %v889_v23, %v804_v25 }
  0xd9   :  { %v180_v24 = vpop.f32.mrf.mxu0 }
  0xda   :  { %v181_v27 = vadd.f32 %v804_v25, %v180_v24  ;;  %v245_v36 = vmax.f32 %v189_v29, 0.0 }
  0xdb   :  { %v890_v26 = vpop.f32.mrf.mxu0 }
  0xdc   :  { %v192_v28 = vadd.f32 %v890_v26, %v804_v25  ;;  %v243_v34 = vmax.f32 %v181_v27, 0.0 }
  0xdd   :  { %v183_v30 = vpop.f32.mrf.mxu0 }
  0xde   :  { %v184_v31 = vadd.f32 %v804_v25, %v183_v30  ;;  %v246_v32 = vmax.f32 %v192_v28, 0.0 }
  0xdf   :  { %v893_v33 = vpop.f32.mrf.mxu0 }
  0xe0   :  { %v244_v35 = vmax.f32 %v184_v31, 0.0  ;;  %v260_v39 = vpack.c.bf16 %v246_v32, %v245_v36  ;;  %v205_v43 = vadd.f32 %v893_v33, %v804_v25 }
  0xe1   :  { %v196_v37 = vpop.f32.mrf.mxu0 }
  0xe2   :  { %v259_v38 = vpack.c.bf16 %v244_v35, %v243_v34  ;;  %v197_v41 = vadd.f32 %v804_v25, %v196_v37  ;;  %v249_v50 = vmax.f32 %v205_v43, 0.0 }
  0xe3   :  { %v894_v40 = vpop.f32.mrf.mxu0 }
  0xe4   :  { %v208_v42 = vadd.f32 %v894_v40, %v804_v25  ;;  %919 = vmatprep.mubr.bf16.mxu1 %v259_v38  ;;  %v247_v48 = vmax.f32 %v197_v41, 0.0 }
  0xe5   :  { %v199_v44 = vpop.f32.mrf.mxu0  ;;  %920 = vmatmul.mubr.bf16.vlgmr.msra.gmra.mxu1 %v260_v39 }
  0xe6   :  { %v200_v45 = vadd.f32 %v804_v25, %v199_v44  ;;  %v250_v46 = vmax.f32 %v208_v42, 0.0 }
  0xe7   :  { %v897_v47 = vpop.f32.mrf.mxu0 }
  0xe8   :  { %v248_v49 = vmax.f32 %v200_v45, 0.0  ;;  %v262_v53 = vpack.c.bf16 %v250_v46, %v249_v50  ;;  %v221_v57 = vadd.f32 %v897_v47, %v804_v25 }
  0xe9   :  { %v212_v51 = vpop.f32.mrf.mxu0 }
  0xea   :  { %v261_v52 = vpack.c.bf16 %v248_v49, %v247_v48  ;;  %v213_v55 = vadd.f32 %v804_v25, %v212_v51  ;;  %v253_v0 = vmax.f32 %v221_v57, 0.0 }
  0xeb   :  { %v898_v54 = vpop.f32.mrf.mxu0 }
  0xec   :  { %v224_v56 = vadd.f32 %v898_v54, %v804_v25  ;;  %923 = vmatprep.mubr.bf16.mxu1 %v261_v52  ;;  %v251_v62 = vmax.f32 %v213_v55, 0.0 }
  0xed   :  { %v215_v58 = vpop.f32.mrf.mxu0  ;;  %924 = vmatmul.mubr.bf16.gmra.mxu1 %v262_v53 }
  0xee   :  { %v216_v59 = vadd.f32 %v804_v25, %v215_v58  ;;  %v254_v60 = vmax.f32 %v224_v56, 0.0 }
  0xef   :  { %v901_v61 = vpop.f32.mrf.mxu0 }
  0xf0   :  { %v252_v63 = vmax.f32 %v216_v59, 0.0  ;;  %v264_v3 = vpack.c.bf16 %v254_v60, %v253_v0  ;;  %v237_v7 = vadd.f32 %v901_v61, %v804_v25 }
  0xf1   :  { %v228_v1 = vpop.f32.mrf.mxu0 }
  0xf2   :  { %v263_v2 = vpack.c.bf16 %v252_v63, %v251_v62  ;;  %v229_v5 = vadd.f32 %v804_v25, %v228_v1  ;;  %v257_v13 = vmax.f32 %v237_v7, 0.0 }
  0xf3   :  { %v902_v4 = vpop.f32.mrf.mxu0 }
  0xf4   :  { %v240_v6 = vadd.f32 %v902_v4, %v804_v25  ;;  %927 = vmatprep.mubr.bf16.mxu1 %v263_v2  ;;  %v255_v11 = vmax.f32 %v229_v5, 0.0 }
  0xf5   :  { %v231_v8 = vpop.f32.mrf.mxu0  ;;  %928 = vmatmul.mubr.bf16.gmra.mxu1 %v264_v3 }
  0xf6   :  { %v232_v9 = vadd.f32 %v804_v25, %v231_v8  ;;  %v258_v10 = vmax.f32 %v240_v6, 0.0 }
  0xf8   :  { %v256_v12 = vmax.f32 %v232_v9, 0.0  ;;  %v266_v15 = vpack.c.bf16 %v258_v10, %v257_v13 }
  0xfa   :  { %v265_v14 = vpack.c.bf16 %v256_v12, %v255_v11  ;;  %v832_v12 = vld [vmem:[%s1328_s6] ss:$0 sm:$0xff]  ;;  %s1110_s6 = smov [#allocation5]  }
  0xfb   :  { %s792_s19 = sshll.u32 %s1110_s6, 4  ;;  %s793_s19 = int_to_ptr.vmem [resolvable:$true] %s792_s19 }
  0xfc   :  { %931 = vmatprep.mubr.bf16.mxu1 %v265_v14  ;;  %s1083_s20 = scalar_lea.vmem %s793_s19, 2048  ;;  %p1088_p6 = scmp.lt.s32.totalorder %s793_s19, %s793_s19 }
  0xfd   :  { %932 = vmatmul.mubr.bf16.gmra.mxu1 %v266_v15  ;;  %p1084_p5 = scmp.ne.s32.totalorder %s793_s19, %s1083_s20  ;;  %p1089_p7 = scmp.lt.s32.totalorder %s1083_s20, %s1083_s20 }
  0xff   :  { %p1090_p8 = por %p1089_p7, %p1088_p6 }
 0x101   :  { %p1091_p9 = pnand %p1090_p8, %p1084_p5 }
 0x1a5   :  { %v921_v19 = vpop.f32.mrf.mxu1 }
 0x1a6   :  { %v381_v25 = vadd.f32 %v921_v19, %v823_v21 }
 0x1a7   :  { %v372_v20 = vpop.f32.mrf.mxu1 }
 0x1a8   :  { %v373_v23 = vadd.f32 %v823_v21, %v372_v20  ;;  %v437_v32 = vmax.f32 %v381_v25, 0.0 }
 0x1a9   :  { %v922_v22 = vpop.f32.mrf.mxu1 }
 0x1aa   :  { %v384_v24 = vadd.f32 %v922_v22, %v823_v21  ;;  %v435_v30 = vmax.f32 %v373_v23, 0.0 }
 0x1ab   :  { %v375_v26 = vpop.f32.mrf.mxu1 }
 0x1ac   :  { %v376_v27 = vadd.f32 %v823_v21, %v375_v26  ;;  %v438_v28 = vmax.f32 %v384_v24, 0.0 }
 0x1ad   :  { %v925_v29 = vpop.f32.mrf.mxu1 }
 0x1ae   :  { %v436_v31 = vmax.f32 %v376_v27, 0.0  ;;  %v452_v35 = vpack.c.bf16 %v438_v28, %v437_v32  ;;  %v397_v39 = vadd.f32 %v925_v29, %v823_v21 }
 0x1af   :  { %v388_v33 = vpop.f32.mrf.mxu1 }
 0x1b0   :  { %v451_v34 = vpack.c.bf16 %v436_v31, %v435_v30  ;;  %v389_v37 = vadd.f32 %v823_v21, %v388_v33  ;;  %v441_v46 = vmax.f32 %v397_v39, 0.0 }
 0x1b1   :  { %v926_v36 = vpop.f32.mrf.mxu1 }
 0x1b2   :  { %v400_v38 = vadd.f32 %v926_v36, %v823_v21  ;;  %951 = vmatprep.mubr.bf16.mxu0 %v451_v34  ;;  %v439_v44 = vmax.f32 %v389_v37, 0.0 }
 0x1b3   :  { %v391_v40 = vpop.f32.mrf.mxu1  ;;  %952 = vmatmul.mubr.bf16.vlgmr.msra.gmra.mxu0 %v452_v35 }
 0x1b4   :  { %v392_v41 = vadd.f32 %v823_v21, %v391_v40  ;;  %v442_v42 = vmax.f32 %v400_v38, 0.0 }
 0x1b5   :  { %v929_v43 = vpop.f32.mrf.mxu1 }
 0x1b6   :  { %v440_v45 = vmax.f32 %v392_v41, 0.0  ;;  %v454_v49 = vpack.c.bf16 %v442_v42, %v441_v46  ;;  %v413_v53 = vadd.f32 %v929_v43, %v823_v21 }
 0x1b7   :  { %v404_v47 = vpop.f32.mrf.mxu1 }
 0x1b8   :  { %v453_v48 = vpack.c.bf16 %v440_v45, %v439_v44  ;;  %v405_v51 = vadd.f32 %v823_v21, %v404_v47  ;;  %v445_v60 = vmax.f32 %v413_v53, 0.0 }
 0x1b9   :  { %v930_v50 = vpop.f32.mrf.mxu1 }
 0x1ba   :  { %v416_v52 = vadd.f32 %v930_v50, %v823_v21  ;;  %955 = vmatprep.mubr.bf16.mxu0 %v453_v48  ;;  %v443_v58 = vmax.f32 %v405_v51, 0.0 }
 0x1bb   :  { %v407_v54 = vpop.f32.mrf.mxu1  ;;  %956 = vmatmul.mubr.bf16.gmra.mxu0 %v454_v49 }
 0x1bc   :  { %v408_v55 = vadd.f32 %v823_v21, %v407_v54  ;;  %v446_v56 = vmax.f32 %v416_v52, 0.0 }
 0x1bd   :  { %v933_v57 = vpop.f32.mrf.mxu1 }
 0x1be   :  { %v444_v59 = vmax.f32 %v408_v55, 0.0  ;;  %v456_v63 = vpack.c.bf16 %v446_v56, %v445_v60  ;;  %v429_v3 = vadd.f32 %v933_v57, %v823_v21 }
 0x1bf   :  { %v420_v61 = vpop.f32.mrf.mxu1 }
 0x1c0   :  { %v455_v62 = vpack.c.bf16 %v444_v59, %v443_v58  ;;  %v421_v1 = vadd.f32 %v823_v21, %v420_v61  ;;  %v449_v9 = vmax.f32 %v429_v3, 0.0 }
 0x1c1   :  { %v934_v0 = vpop.f32.mrf.mxu1 }
 0x1c2   :  { %v432_v2 = vadd.f32 %v934_v0, %v823_v21  ;;  %959 = vmatprep.mubr.bf16.mxu0 %v455_v62  ;;  %v447_v7 = vmax.f32 %v421_v1, 0.0 }
 0x1c3   :  { %v423_v4 = vpop.f32.mrf.mxu1  ;;  %960 = vmatmul.mubr.bf16.gmra.mxu0 %v456_v63 }
 0x1c4   :  { %v424_v5 = vadd.f32 %v823_v21, %v423_v4  ;;  %v450_v6 = vmax.f32 %v432_v2, 0.0 }
 0x1c6   :  { %v448_v8 = vmax.f32 %v424_v5, 0.0  ;;  %v458_v11 = vpack.c.bf16 %v450_v6, %v449_v9 }
 0x1c8   :  { %v457_v10 = vpack.c.bf16 %v448_v8, %v447_v7 }
 0x1ca   :  { %963 = vmatprep.mubr.bf16.mxu0 %v457_v10 }
 0x1cb   :  { %964 = vmatmul.mubr.bf16.gmra.mxu0 %v458_v11 }
 0x273   :  { %v953_v13 = vpop.f32.mrf.mxu0 }
 0x274   :  { %v573_v14 = vadd.f32 %v953_v13, %v832_v12 }
 0x275   :  { %v564_v15 = vpop.f32.mrf.mxu0 }
 0x276   :  { %v565_v16 = vadd.f32 %v832_v12, %v564_v15  ;;  %631 = vmax.xlane.f32.xlu1 %v573_v14 }
 0x277   :  { %v954_v17 = vpop.f32.mrf.mxu0 }
 0x278   :  { %v576_v18 = vadd.f32 %v954_v17, %v832_v12  ;;  %627 = vmax.xlane.f32.xlu0 %v565_v16 }
 0x279   :  { %v567_v19 = vpop.f32.mrf.mxu0 }
 0x27a   :  { %v568_v20 = vadd.f32 %v832_v12, %v567_v19  ;;  %633 = vmax.xlane.f32.xlu1 %v576_v18 }
 0x27b   :  { %v957_v21 = vpop.f32.mrf.mxu0 }
 0x27c   :  { %629 = vmax.xlane.f32.xlu0 %v568_v20  ;;  %v589_v23 = vadd.f32 %v957_v21, %v832_v12 }
 0x27d   :  { %v580_v22 = vpop.f32.mrf.mxu0 }
 0x27e   :  { %v581_v27 = vadd.f32 %v832_v12, %v580_v22 }
 0x27f   :  { %v958_v24 = vpop.f32.mrf.mxu0 }
 0x280   :  { %v592_v25 = vadd.f32 %v958_v24, %v832_v12  ;;  %639 = vmax.xlane.f32.xlu0 %v589_v23 }
 0x281   :  { %v583_v26 = vpop.f32.mrf.mxu0 }
 0x282   :  { %641 = vmax.xlane.f32.xlu1 %v592_v25  ;;  %v584_v29 = vadd.f32 %v832_v12, %v583_v26 }
 0x283   :  { %v961_v28 = vpop.f32.mrf.mxu0 }
 0x284   :  { %635 = vmax.xlane.f32.xlu0 %v581_v27  ;;  %v605_v31 = vadd.f32 %v961_v28, %v832_v12 }
 0x285   :  { %v596_v30 = vpop.f32.mrf.mxu0 }
 0x286   :  { %637 = vmax.xlane.f32.xlu1 %v584_v29  ;;  %v1229_v35 = vadd.f32 %v832_v12, %v596_v30 }
 0x287   :  { %v962_v32 = vpop.f32.mrf.mxu0 }
 0x288   :  { %v1227_v33 = vadd.f32 %v962_v32, %v832_v12  ;;  %647 = vmax.xlane.f32.xlu0 %v605_v31 }
 0x289   :  { %v599_v34 = vpop.f32.mrf.mxu0 }
 0x28a   :  { %649 = vmax.xlane.f32.xlu1 %v1227_v33  ;;  %v1232_v37 = vadd.f32 %v832_v12, %v599_v34 }
 0x28b   :  { %v965_v36 = vpop.f32.mrf.mxu0 }
 0x28c   :  { %643 = vmax.xlane.f32.xlu0 %v1229_v35  ;;  %v1239_v42 = vadd.f32 %v965_v36, %v832_v12 }
 0x28d   :  { %v612_v38 = vpop.f32.mrf.mxu0 }
 0x28e   :  { %v1235_v39 = vadd.f32 %v832_v12, %v612_v38  ;;  %645 = vmax.xlane.f32.xlu1 %v1232_v37 }
 0x28f   :  { %v966_v40 = vpop.f32.mrf.mxu0 }
 0x290   :  { %651 = vmax.xlane.f32.xlu0 %v1235_v39  ;;  %v1245_v44 = vadd.f32 %v966_v40, %v832_v12 }
 0x291   :  { %v615_v41 = vpop.f32.mrf.mxu0 }
 0x292   :  { %v1241_v43 = vadd.f32 %v832_v12, %v615_v41 }
 0x294   :  { %653 = vmax.xlane.f32.xlu1 %v1241_v43  ;;  %655 = vmax.xlane.f32.xlu0 %v1239_v42 }
 0x298   :  { %657 = vmax.xlane.f32.xlu1 %v1245_v44 }
 0x2ff   :  { %v632_v45 = vpop.xlane.xlu1 %631 }
 0x300   :  { %v661_v46 = vsub.f32 %v573_v14, %v632_v45 }
 0x301   :  { %v628_v47 = vpop.xlane.xlu0 %627 }
 0x302   :  { %v679_v48 = vmul.f32 1.442695, %v661_v46  ;;  %v659_v49 = vsub.f32 %v565_v16, %v628_v47 }
 0x303   :  { %v634_v50 = vpop.xlane.xlu1 %633 }
 0x304   :  { %999 = vpow2.f32 %v679_v48  ;;  %v675_v51 = vmul.f32 1.442695, %v659_v49  ;;  %v662_v52 = vsub.f32 %v576_v18, %v634_v50 }
 0x305   :  { %v630_v53 = vpop.xlane.xlu0 %629 }
 0x306   :  { %v681_v54 = vmul.f32 1.442695, %v662_v52  ;;  %v660_v55 = vsub.f32 %v568_v20, %v630_v53  ;;  %1001 = vpow2.f32 %v675_v51 }
 0x308   :  { %1003 = vpow2.f32 %v681_v54  ;;  %v677_v56 = vmul.f32 1.442695, %v660_v55 }
 0x309   :  { %v640_v57 = vpop.xlane.xlu0 %639 }
 0x30a   :  { %v665_v58 = vsub.f32 %v589_v23, %v640_v57  ;;  %1005 = vpow2.f32 %v677_v56 }
 0x30b   :  { %v642_v59 = vpop.xlane.xlu1 %641 }
 0x30c   :  { %v687_v60 = vmul.f32 1.442695, %v665_v58  ;;  %v666_v61 = vsub.f32 %v592_v25, %v642_v59 }
 0x30d   :  { %v636_v62 = vpop.xlane.xlu0 %635 }
 0x30e   :  { %1007 = vpow2.f32 %v687_v60  ;;  %v689_v63 = vmul.f32 1.442695, %v666_v61  ;;  %v663_v0 = vsub.f32 %v581_v27, %v636_v62 }
 0x30f   :  { %v638_v1 = vpop.xlane.xlu1 %637 }
 0x310   :  { %1009 = vpow2.f32 %v689_v63  ;;  %v683_v2 = vmul.f32 1.442695, %v663_v0  ;;  %v664_v3 = vsub.f32 %v584_v29, %v638_v1 }
 0x311   :  { %v1248_v4 = vpop.eup %999  ;;  %v648_v5 = vpop.xlane.xlu0 %647 }
 0x312   :  { %1011 = vpow2.f32 %v683_v2  ;;  %v685_v6 = vmul.f32 1.442695, %v664_v3  ;;  %v669_v7 = vsub.f32 %v605_v31, %v648_v5  ;;  %711 = vadd.xlane.f32.xlu0 %v1248_v4 }
 0x313   :  { %v650_v8 = vpop.xlane.xlu1 %649  ;;  %v1251_v9 = vpop.eup %1001 }
 0x314   :  { %1013 = vpow2.f32 %v685_v6  ;;  %v695_v10 = vmul.f32 1.442695, %v669_v7  ;;  %v670_v11 = vsub.f32 %v1227_v33, %v650_v8 }
 0x315   :  { %v1254_v12 = vpop.eup %1003  ;;  %v644_v13 = vpop.xlane.xlu0 %643 }
 0x316   :  { %1015 = vpow2.f32 %v695_v10  ;;  %v697_v14 = vmul.f32 1.442695, %v670_v11  ;;  %v667_v15 = vsub.f32 %v1229_v35, %v644_v13  ;;  %713 = vadd.xlane.f32.xlu1 %v1254_v12  ;;  %707 = vadd.xlane.f32.xlu0 %v1251_v9 }
 0x317   :  { %v646_v16 = vpop.xlane.xlu1 %645  ;;  %v1260_v19 = vpop.eup %1005 }
 0x318   :  { %1017 = vpow2.f32 %v697_v14  ;;  %v691_v17 = vmul.f32 1.442695, %v667_v15  ;;  %v668_v18 = vsub.f32 %v1232_v37, %v646_v16 }
 0x319   :  { %v652_v20 = vpop.xlane.xlu0 %651 }
 0x31a   :  { %1019 = vpow2.f32 %v691_v17  ;;  %v693_v21 = vmul.f32 1.442695, %v668_v18  ;;  %v671_v22 = vsub.f32 %v1235_v39, %v652_v20  ;;  %709 = vadd.xlane.f32.xlu1 %v1260_v19 }
 0x31b   :  { %v1264_v23 = vpop.eup %1007 }
 0x31c   :  { %1021 = vpow2.f32 %v693_v21  ;;  %v699_v24 = vmul.f32 1.442695, %v671_v22  ;;  %719 = vadd.xlane.f32.xlu0 %v1264_v23 }
 0x31d   :  { %v1267_v25 = vpop.eup %1009  ;;  %v654_v26 = vpop.xlane.xlu1 %653 }
 0x31e   :  { %v656_v27 = vpop.xlane.xlu0 %655  ;;  %1023 = vpow2.f32 %v699_v24  ;;  %v672_v28 = vsub.f32 %v1241_v43, %v654_v26  ;;  %721 = vadd.xlane.f32.xlu1 %v1267_v25 }
 0x31f   :  { %v673_v29 = vsub.f32 %v1239_v42, %v656_v27  ;;  %v1272_v30 = vpop.eup %1011 }
 0x320   :  { %v701_v31 = vmul.f32 1.442695, %v672_v28  ;;  %715 = vadd.xlane.f32.xlu0 %v1272_v30 }
 0x321   :  { %v703_v32 = vmul.f32 1.442695, %v673_v29  ;;  %v1275_v33 = vpop.eup %1013  ;;  %v658_v34 = vpop.xlane.xlu1 %657 }
 0x322   :  { %1025 = vpow2.f32 %v701_v31  ;;  %v674_v35 = vsub.f32 %v1245_v44, %v658_v34  ;;  %717 = vadd.xlane.f32.xlu1 %v1275_v33 }
 0x323   :  { %v1279_v36 = vpop.eup %1015  ;;  %1027 = vpow2.f32 %v703_v32 }
 0x324   :  { %v705_v37 = vmul.f32 1.442695, %v674_v35  ;;  %727 = vadd.xlane.f32.xlu0 %v1279_v36 }
 0x325   :  { %v1282_v38 = vpop.eup %1017 }
 0x326   :  { %1029 = vpow2.f32 %v705_v37  ;;  %729 = vadd.xlane.f32.xlu1 %v1282_v38 }
 0x327   :  { %v1285_v39 = vpop.eup %1019 }
 0x328   :  { %723 = vadd.xlane.f32.xlu0 %v1285_v39 }
 0x329   :  { %v1288_v40 = vpop.eup %1021 }
 0x32a   :  { %725 = vadd.xlane.f32.xlu1 %v1288_v40 }
 0x32b   :  { %v1291_v41 = vpop.eup %1023 }
 0x32c   :  { %731 = vadd.xlane.f32.xlu0 %v1291_v41 }
 0x32f   :  { %v1294_v42 = vpop.eup %1025 }
 0x330   :  { %v1296_v43 = vpop.eup %1027  ;;  %733 = vadd.xlane.f32.xlu1 %v1294_v42 }
 0x331   :  { %735 = vadd.xlane.f32.xlu0 %v1296_v43 }
 0x333   :  { %v1300_v44 = vpop.eup %1029 }
 0x334   :  { %737 = vadd.xlane.f32.xlu1 %v1300_v44 }
 0x39b   :  { %v712_v45 = vpop.xlane.xlu0 %711 }
 0x39c   :  { %1031 = vrcp.f32 %v712_v45 }
 0x39f   :  { %v714_v46 = vpop.xlane.xlu1 %713  ;;  %v708_v47 = vpop.xlane.xlu0 %707 }
 0x3a0   :  { %1033 = vrcp.f32 %v714_v46 }
 0x3a1   :  { %1035 = vrcp.f32 %v708_v47 }
 0x3a3   :  { %v710_v48 = vpop.xlane.xlu1 %709 }
 0x3a4   :  { %1037 = vrcp.f32 %v710_v48 }
 0x3a5   :  { %v720_v49 = vpop.xlane.xlu0 %719 }
 0x3a6   :  { %1039 = vrcp.f32 %v720_v49 }
 0x3a7   :  { %v722_v50 = vpop.xlane.xlu1 %721 }
 0x3a8   :  { %1041 = vrcp.f32 %v722_v50 }
 0x3a9   :  { %v1032_v51 = vpop.eup %1031  ;;  %v716_v52 = vpop.xlane.xlu0 %715 }
 0x3aa   :  { %v757_v53 = vmul.f32 %v1032_v51, %v1248_v4  ;;  %1043 = vrcp.f32 %v716_v52 }
 0x3ab   :  { %v718_v54 = vpop.xlane.xlu1 %717 }
 0x3ac   :  { %773 = vst [vmem:[#allocation5 + $0x10] sm:$0xff] %v757_v53  ;;  %1045 = vrcp.f32 %v718_v54 }
 0x3ad   :  { %v1034_v55 = vpop.eup %1033  ;;  %v728_v56 = vpop.xlane.xlu0 %727 }
 0x3ae   :  { %v1036_v57 = vpop.eup %1035  ;;  %v758_v58 = vmul.f32 %v1034_v55, %v1254_v12  ;;  %1047 = vrcp.f32 %v728_v56 }
 0x3af   :  { %v755_v59 = vmul.f32 %v1036_v57, %v1251_v9  ;;  %v730_v60 = vpop.xlane.xlu1 %729 }
 0x3b0   :  { %774 = vst [vmem:[#allocation5 + $0x18] sm:$0xff] %v758_v58  ;;  %1049 = vrcp.f32 %v730_v60 }
 0x3b1   :  { %v1038_v61 = vpop.eup %1037  ;;  %771 = vst [vmem:[#allocation5] sm:$0xff] %v755_v59  ;;  %v724_v62 = vpop.xlane.xlu0 %723 }
 0x3b2   :  { %v756_v63 = vmul.f32 %v1038_v61, %v1260_v19  ;;  %1051 = vrcp.f32 %v724_v62 }
 0x3b3   :  { %v1040_v0 = vpop.eup %1039  ;;  %v726_v1 = vpop.xlane.xlu1 %725 }
 0x3b4   :  { %772 = vst [vmem:[#allocation5 + $0x8] sm:$0xff] %v756_v63  ;;  %v761_v2 = vmul.f32 %v1040_v0, %v1264_v23  ;;  %1053 = vrcp.f32 %v726_v1 }
 0x3b5   :  { %v1042_v3 = vpop.eup %1041  ;;  %v732_v4 = vpop.xlane.xlu0 %731 }
 0x3b6   :  { %777 = vst [vmem:[#allocation5 + $0x30] sm:$0xff] %v761_v2  ;;  %v762_v5 = vmul.f32 %v1042_v3, %v1267_v25  ;;  %1055 = vrcp.f32 %v732_v4 }
 0x3b7   :  { %v1044_v6 = vpop.eup %1043 }
 0x3b8   :  { %778 = vst [vmem:[#allocation5 + $0x38] sm:$0xff] %v762_v5  ;;  %v759_v7 = vmul.f32 %v1044_v6, %v1272_v30 }
 0x3b9   :  { %v1046_v8 = vpop.eup %1045  ;;  %v734_v9 = vpop.xlane.xlu1 %733 }
 0x3ba   :  { %775 = vst [vmem:[#allocation5 + $0x20] sm:$0xff] %v759_v7  ;;  %v760_v10 = vmul.f32 %v1046_v8, %v1275_v33  ;;  %1057 = vrcp.f32 %v734_v9  ;;  %v736_v11 = vpop.xlane.xlu0 %735 }
 0x3bb   :  { %v1048_v12 = vpop.eup %1047  ;;  %1059 = vrcp.f32 %v736_v11 }
 0x3bc   :  { %776 = vst [vmem:[#allocation5 + $0x28] sm:$0xff] %v760_v10  ;;  %v765_v13 = vmul.f32 %v1048_v12, %v1279_v36 }
 0x3bd   :  { %v1050_v14 = vpop.eup %1049  ;;  %v738_v15 = vpop.xlane.xlu1 %737 }
 0x3be   :  { %781 = vst [vmem:[#allocation5 + $0x50] sm:$0xff] %v765_v13  ;;  %v766_v16 = vmul.f32 %v1050_v14, %v1282_v38  ;;  %1061 = vrcp.f32 %v738_v15 }
 0x3bf   :  { %v1052_v17 = vpop.eup %1051 }
 0x3c0   :  { %782 = vst [vmem:[#allocation5 + $0x58] sm:$0xff] %v766_v16  ;;  %v763_v18 = vmul.f32 %v1052_v17, %v1285_v39 }
 0x3c1   :  { %v1054_v19 = vpop.eup %1053 }
 0x3c2   :  { %779 = vst [vmem:[#allocation5 + $0x40] sm:$0xff] %v763_v18  ;;  %v764_v20 = vmul.f32 %v1054_v19, %v1288_v40 }
 0x3c3   :  { %v1056_v21 = vpop.eup %1055 }
 0x3c4   :  { %780 = vst [vmem:[#allocation5 + $0x48] sm:$0xff] %v764_v20  ;;  %v767_v22 = vmul.f32 %v1056_v21, %v1291_v41 }
 0x3c6   :  { %783 = vst [vmem:[#allocation5 + $0x60] sm:$0xff] %v767_v22 }
 0x3c7   :  { %v1058_v23 = vpop.eup %1057 }
 0x3c8   :  { %v1060_v24 = vpop.eup %1059  ;;  %v768_v25 = vmul.f32 %v1058_v23, %v1294_v42 }
 0x3c9   :  { %v769_v26 = vmul.f32 %v1060_v24, %v1296_v43 }
 0x3ca   :  { %784 = vst [vmem:[#allocation5 + $0x68] sm:$0xff] %v768_v25 }
 0x3cb   :  { %v1062_v27 = vpop.eup %1061  ;;  %785 = vst [vmem:[#allocation5 + $0x70] sm:$0xff] %v769_v26 }
 0x3cc   :  { %v770_v28 = vmul.f32 %v1062_v27, %v1300_v44 }
 0x3ce   :  { %786 = vst [vmem:[#allocation5 + $0x78] sm:$0xff] %v770_v28 }
 0x3cf   :  { %1094 = shalt.err (!%p1091_p9)
}
 0x3d0   :  { %s1111_s21 = smov 128   ;;  %s1112_s22 = smov 8  }
 0x3d1   :  { %798 = dma.vmem_to_hbm [thread:$0]  %s793_s19, 2048, %s1329_s7, [#allocation4], %s1111_s21, %s1111_s21, %s1112_s22  }
 0x3d2   :  { %1105 = dma.done.wait [#allocation4], 2048  }
 0x3d3   :  { %1106 = vsyncadd [#allocation4], 4294965248 }
 0x3d4   :  { %802 = vsyncpa [#allocation3], 1 }
 0x3d5   :  { %803 = vsyncpa [#allocation4], 1 }

</bundles_post_ra>
